<compile_context>
chip_gen: v7x
topology: tpu7x:2x2x1
jax: 0.10.0
libtpu: 0.0.40
codegen_flags: <defaults>
</compile_context>

<pallas_src>
import functools

import jax
import jax.numpy as jnp
from jax.experimental import pallas as pl
from jax.experimental.pallas import tpu as pltpu

LANE = 128
ROW_ALIGN = 16      # sublane alignment that works for both f32 (8) and bf16 (16)
MAX_TILE_R = 1024   # 1024x128 f32 = 512 KiB per buffer; safe on v5e/v6e/v7x


def _focal_elems(x, t, alpha, gamma):
    """Per-element focal loss, matching PyTorch sigmoid + BCE semantics."""
    p = jax.nn.sigmoid(x)
    # F.binary_cross_entropy clamps each log term at -100.
    log_p = jnp.maximum(jnp.log(p), -100.0)
    log_1mp = jnp.maximum(jnp.log(1.0 - p), -100.0)
    ce = -(t * log_p + (1.0 - t) * log_1mp)
    pt = jnp.where(t == 1.0, p, 1.0 - p)
    one_minus_pt = 1.0 - pt

    g = float(gamma)
    if g == int(g) and 0.0 <= g <= 8.0:
        gi = int(g)
        if gi == 0:
            mod = jnp.ones_like(one_minus_pt)
        else:
            mod = one_minus_pt
            for _ in range(gi - 1):      # repeated multiply (VPU) instead of pow (EUP)
                mod = mod * one_minus_pt
    else:
        mod = one_minus_pt ** gamma
    return alpha * mod * ce


def _focal_partial_kernel(x_ref, t_ref, o_ref, *, alpha, gamma, n, tile_r):
    """Writes an (8,128) partial-sum slab per grid block (no carried state)."""
    i = pl.program_id(0)
    last = pl.num_programs(0) - 1

    x = x_ref[...].astype(jnp.float32)
    t = t_ref[...].astype(jnp.float32)
    fl = _focal_elems(x, t, alpha, gamma)

    def fold(v):
        # (tile_r,128) -> (tile_r//8, 8, 128) -> sum over leading dim: pure VPU adds.
        return v.reshape(tile_r // 8, 8, LANE).sum(axis=0)

    @pl.when(i != last)
    def _():
        o_ref[...] = fold(fl)

    @pl.when(i == last)
    def _():
        # Mask out the padded tail of the last (possibly ragged) block.
        base = i * (tile_r * LANE)
        r = jax.lax.broadcasted_iota(jnp.int32, (tile_r, LANE), 0)
        c = jax.lax.broadcasted_iota(jnp.int32, (tile_r, LANE), 1)
        keep = (base + r * LANE + c) < n
        o_ref[...] = fold(jnp.where(keep, fl, jnp.float32(0.0)))


def _focal_none_kernel(x_ref, t_ref, o_ref, *, alpha, gamma):
    x = x_ref[...].astype(jnp.float32)
    t = t_ref[...].astype(jnp.float32)
    o_ref[...] = _focal_elems(x, t, alpha, gamma)


def _as_kernel_dtype(v):
    if v.dtype == jnp.float32 or v.dtype == jnp.bfloat16:
        return v
    return v.astype(jnp.float32)


def focal_loss(inputs, targets, alpha=1.0, gamma=2.0, reduction="mean"):
    """Pallas implementation of FocalLoss.forward."""
    orig_shape = inputs.shape
    n = int(inputs.size)  # static element count

    x = _as_kernel_dtype(inputs.reshape(-1))
    t = _as_kernel_dtype(targets.reshape(-1))

    # Row layout: lane-major slab [rows, 128] with rows aligned for f32/bf16 tiling.
    rows = pl.cdiv(pl.cdiv(n, LANE), ROW_ALIGN) * ROW_ALIGN
    tile_r = min(MAX_TILE_R, rows)
    grid_n = pl.cdiv(rows, tile_r)
    rows = grid_n * tile_r
    padded = rows * LANE
    if padded != n:  # pad only when needed (static decision)
        x = jnp.pad(x, (0, padded - n))
        t = jnp.pad(t, (0, padded - n))
    x2 = x.reshape(rows, LANE)
    t2 = t.reshape(rows, LANE)

    alpha = float(alpha)
    gamma = float(gamma)

    if reduction in ("mean", "sum"):
        kern = functools.partial(
            _focal_partial_kernel, alpha=alpha, gamma=gamma, n=n, tile_r=tile_r
        )
        partials = pl.pallas_call(
            kern,
            out_shape=jax.ShapeDtypeStruct((grid_n * 8, LANE), jnp.float32),
            grid_spec=pltpu.PrefetchScalarGridSpec(
                num_scalar_prefetch=0,
                grid=(grid_n,),
                in_specs=[
                    pl.BlockSpec((tile_r, LANE), lambda i: (i, 0)),
                    pl.BlockSpec((tile_r, LANE), lambda i: (i, 0)),
                ],
                out_specs=pl.BlockSpec((8, LANE), lambda i: (i, 0)),
            ),
            compiler_params=pltpu.CompilerParams(
                dimension_semantics=("parallel",)
            ),
        )(x2, t2)
        total = jnp.sum(partials, dtype=jnp.float32)
        if reduction == "mean":
            return total / jnp.float32(n)
        return total
    else:  # reduction == 'none' -> elementwise focal loss, original shape
        kern = functools.partial(_focal_none_kernel, alpha=alpha, gamma=gamma)
        out2 = pl.pallas_call(
            kern,
            out_shape=jax.ShapeDtypeStruct((rows, LANE), jnp.float32),
            grid_spec=pltpu.PrefetchScalarGridSpec(
                num_scalar_prefetch=0,
                grid=(grid_n,),
                in_specs=[
                    pl.BlockSpec((tile_r, LANE), lambda i: (i, 0)),
                    pl.BlockSpec((tile_r, LANE), lambda i: (i, 0)),
                ],
                out_specs=pl.BlockSpec((tile_r, LANE), lambda i: (i, 0)),
            ),
            compiler_params=pltpu.CompilerParams(
                dimension_semantics=("parallel",)
            ),
        )(x2, t2)
        return out2.reshape(-1)[:n].reshape(orig_shape)


def focal_loss_ref(inputs, targets, alpha=1.0, gamma=2.0, reduction="mean"):
    """Pure-JAX reference mirroring the PyTorch module (uses the ** gamma path)."""
    x = inputs.astype(jnp.float32)
    t = targets.astype(jnp.float32)
    p = jax.nn.sigmoid(x)
    log_p = jnp.maximum(jnp.log(p), -100.0)
    log_1mp = jnp.maximum(jnp.log(1.0 - p), -100.0)
    ce = -(t * log_p + (1.0 - t) * log_1mp)
    pt = jnp.where(t == 1.0, p, 1.0 - p)
    fl = alpha * (1.0 - pt) ** gamma * ce
    if reduction == "mean":
        return fl.mean()
    elif reduction == "sum":
        return fl.sum()
    return fl


if __name__ == "__main__":
    key = jax.random.PRNGKey(0)
    k1, k2 = jax.random.split(key)
    # NCHW example: batch=2, channels=4, spatial=16x16
    x = jax.random.normal(k1, (2, 4, 16, 16), dtype=jnp.float32)
    targets = (jax.random.uniform(k2, (2, 4, 16, 16)) > 0.5).astype(jnp.float32)

    # mean reduction (default module behavior)
    out_mean = jax.block_until_ready(
        focal_loss(x, targets, alpha=1.0, gamma=2.0, reduction="mean")
    )
    ref_mean = focal_loss_ref(x, targets, alpha=1.0, gamma=2.0, reduction="mean")
    assert jnp.allclose(out_mean, ref_mean, rtol=1e-5, atol=1e-6), (out_mean, ref_mean)

    # sum reduction
    out_sum = jax.block_until_ready(
        focal_loss(x, targets, alpha=1.0, gamma=2.0, reduction="sum")
    )
    ref_sum = focal_loss_ref(x, targets, alpha=1.0, gamma=2.0, reduction="sum")
    assert jnp.allclose(out_sum, ref_sum, rtol=1e-5, atol=1e-5), (out_sum, ref_sum)

    # 'none' reduction (elementwise)
    out_none = jax.block_until_ready(
        focal_loss(x, targets, alpha=1.0, gamma=2.0, reduction="none")
    )
    ref_none = focal_loss_ref(x, targets, alpha=1.0, gamma=2.0, reduction="none")
    assert jnp.allclose(out_none, ref_none, rtol=1e-5, atol=1e-6)

    print("KERNEL_OK")
</pallas_src>

<mosaic_0001>
module attributes {stable_mosaic.version = 11 : i64} {
  func.func @_focal_partial_kernel(%arg0: i32, %arg1: memref<16x128xf32, #tpu.memory_space<vmem>>, %arg2: memref<16x128xf32, #tpu.memory_space<vmem>>, %arg3: memref<8x128xf32, #tpu.memory_space<vmem>>) attributes {dimension_semantics = [#tpu.dimension_semantics<parallel>], iteration_bounds = array<i64: 1>, scalar_prefetch = 0 : i64, scratch_operands = 0 : i64, tpu.core_type = #tpu.core_type<tc>, window_params = [{transform_indices = @transform_0, window_bounds = array<i64: 16, 128>}, {transform_indices = @transform_1, window_bounds = array<i64: 16, 128>}, {transform_indices = @transform_2, window_bounds = array<i64: 8, 128>}]} {
    %c0 = arith.constant 0 : index
    %c0_0 = arith.constant 0 : index
    %0 = vector.load %arg1[%c0, %c0_0] : memref<16x128xf32, #tpu.memory_space<vmem>>, vector<16x128xf32>
    %c0_1 = arith.constant 0 : index
    %c0_2 = arith.constant 0 : index
    %1 = vector.load %arg2[%c0_1, %c0_2] : memref<16x128xf32, #tpu.memory_space<vmem>>, vector<16x128xf32>
    %2 = arith.negf %0 : vector<16x128xf32>
    %3 = math.exp %2 : vector<16x128xf32>
    %cst = arith.constant 1.000000e+00 : f32
    %4 = vector.broadcast %cst : f32 to vector<16x128xf32>
    %5 = arith.addf %4, %3 : vector<16x128xf32>
    %6 = arith.divf %4, %5 : vector<16x128xf32>
    %7 = math.log %6 : vector<16x128xf32>
    %cst_3 = arith.constant -1.000000e+02 : f32
    %8 = vector.broadcast %cst_3 : f32 to vector<16x128xf32>
    %9 = arith.maximumf %7, %8 : vector<16x128xf32>
    %cst_4 = arith.constant 1.000000e+00 : f32
    %10 = vector.broadcast %cst_4 : f32 to vector<16x128xf32>
    %11 = arith.subf %10, %6 : vector<16x128xf32>
    %12 = math.log %11 : vector<16x128xf32>
    %cst_5 = arith.constant -1.000000e+02 : f32
    %13 = vector.broadcast %cst_5 : f32 to vector<16x128xf32>
    %14 = arith.maximumf %12, %13 : vector<16x128xf32>
    %15 = arith.mulf %1, %9 : vector<16x128xf32>
    %cst_6 = arith.constant 1.000000e+00 : f32
    %16 = vector.broadcast %cst_6 : f32 to vector<16x128xf32>
    %17 = arith.subf %16, %1 : vector<16x128xf32>
    %18 = arith.mulf %17, %14 : vector<16x128xf32>
    %19 = arith.addf %15, %18 : vector<16x128xf32>
    %cst_7 = arith.constant 0.000000e+00 : f32
    %20 = vector.broadcast %cst_7 : f32 to vector<16x128xf32>
    %21 = arith.subf %20, %19 : vector<16x128xf32>
    %cst_8 = arith.constant 1.000000e+00 : f32
    %22 = vector.broadcast %cst_8 : f32 to vector<16x128xf32>
    %23 = arith.cmpf oeq, %1, %22 : vector<16x128xf32>
    %cst_9 = arith.constant 1.000000e+00 : f32
    %24 = vector.broadcast %cst_9 : f32 to vector<16x128xf32>
    %25 = arith.subf %24, %6 : vector<16x128xf32>
    %26 = arith.select %23, %6, %25 : vector<16x128xi1>, vector<16x128xf32>
    %cst_10 = arith.constant 1.000000e+00 : f32
    %27 = vector.broadcast %cst_10 : f32 to vector<16x128xf32>
    %28 = arith.subf %27, %26 : vector<16x128xf32>
    %29 = arith.mulf %28, %28 : vector<16x128xf32>
    %cst_11 = arith.constant 1.000000e+00 : f32
    %30 = vector.broadcast %cst_11 : f32 to vector<16x128xf32>
    %31 = arith.mulf %30, %29 : vector<16x128xf32>
    %32 = arith.mulf %31, %21 : vector<16x128xf32>
    %c0_i32 = arith.constant 0 : i32
    %33 = arith.cmpi ne, %arg0, %c0_i32 : i32
    %34 = arith.extui %33 : i1 to i32
    %c0_i32_12 = arith.constant 0 : i32
    %35 = arith.cmpi ne, %34, %c0_i32_12 : i32
    scf.if %35 {
      %39 = vector.shape_cast %32 : vector<16x128xf32> to vector<2x8x128xf32>
      %cst_15 = arith.constant dense<0.000000e+00> : vector<8x128xf32>
      %40 = vector.multi_reduction <add>, %39, %cst_15 [0] : vector<2x8x128xf32> to vector<8x128xf32>
      %c0_16 = arith.constant 0 : index
      %c0_17 = arith.constant 0 : index
      %41 = vector.load %arg3[%c0_16, %c0_17] : memref<8x128xf32, #tpu.memory_space<vmem>>, vector<8x128xf32>
      tpu.vector_store %arg3[%c0_16, %c0_17], %40 {strides = array<i32>} : memref<8x128xf32, #tpu.memory_space<vmem>>, vector<8x128xf32>,
    } else {
    }
    %c0_i32_13 = arith.constant 0 : i32
    %36 = arith.cmpi eq, %arg0, %c0_i32_13 : i32
    %37 = arith.extui %36 : i1 to i32
    %c0_i32_14 = arith.constant 0 : i32
    %38 = arith.cmpi ne, %37, %c0_i32_14 : i32
    scf.if %38 {
      %c2048_i32 = arith.constant 2048 : i32
      %39 = arith.muli %arg0, %c2048_i32 : i32
      %40 = tpu.iota {dimensions = array<i32: 0>} : vector<16x128xi32>
      %41 = tpu.iota {dimensions = array<i32: 1>} : vector<16x128xi32>
      %c128_i32 = arith.constant 128 : i32
      %42 = vector.broadcast %c128_i32 : i32 to vector<16x128xi32>
      %43 = arith.muli %40, %42 : vector<16x128xi32>
      %44 = vector.broadcast %39 : i32 to vector<16x128xi32>
      %45 = arith.addi %44, %43 : vector<16x128xi32>
      %46 = arith.addi %45, %41 : vector<16x128xi32>
      %c2048_i32_15 = arith.constant 2048 : i32
      %47 = vector.broadcast %c2048_i32_15 : i32 to vector<16x128xi32>
      %48 = arith.cmpi slt, %46, %47 : vector<16x128xi32>
      %cst_16 = arith.constant 0.000000e+00 : f32
      %49 = vector.broadcast %cst_16 : f32 to vector<16x128xf32>
      %50 = arith.select %48, %32, %49 : vector<16x128xi1>, vector<16x128xf32>
      %51 = vector.shape_cast %50 : vector<16x128xf32> to vector<2x8x128xf32>
      %cst_17 = arith.constant dense<0.000000e+00> : vector<8x128xf32>
      %52 = vector.multi_reduction <add>, %51, %cst_17 [0] : vector<2x8x128xf32> to vector<8x128xf32>
      %c0_18 = arith.constant 0 : index
      %c0_19 = arith.constant 0 : index
      %53 = vector.load %arg3[%c0_18, %c0_19] : memref<8x128xf32, #tpu.memory_space<vmem>>, vector<8x128xf32>
      tpu.vector_store %arg3[%c0_18, %c0_19], %52 {strides = array<i32>} : memref<8x128xf32, #tpu.memory_space<vmem>>, vector<8x128xf32>,
    } else {
    }
    return
  }
  func.func @transform_0(%arg0: i32) -> (i32, i32) {
    %c0_i32 = arith.constant 0 : i32
    %c0_i32_0 = arith.constant 0 : i32
    return %arg0, %c0_i32 : i32, i32
  }
  func.func @transform_1(%arg0: i32) -> (i32, i32) {
    %c0_i32 = arith.constant 0 : i32
    %c0_i32_0 = arith.constant 0 : i32
    return %arg0, %c0_i32 : i32, i32
  }
  func.func @transform_2(%arg0: i32) -> (i32, i32) {
    %c0_i32 = arith.constant 0 : i32
    %c0_i32_0 = arith.constant 0 : i32
    return %arg0, %c0_i32 : i32, i32
  }
}

</mosaic_0001>

<bundles_post_ra>
// kernel: tpu_custom_call.1
= control target key start
LH: loop header
LB: loop body
LE: loop exit
PB: predicated region body
PF: predicated region fallthrough
CT: control target
= control target key end

     0   :  { %7 = vsyncpa [#allocation3], 0  ;;  %s286_s0 = inlined_call_operand.hbm [shape: f32[16,128], index: 0, kind: input, shape index: {}]   ;;  %s287_s1 = inlined_call_operand.hbm [shape: f32[16,128], index: 1, kind: input, shape index: {}]   ;;  %s288_s2 = inlined_call_operand.hbm [shape: f32[8,128], index: 2, kind: output, shape index: {}]  }
   0x1   :  { %8 = vsyncpa [#allocation6], 0 }
   0x2   :  { %9 = vsyncpa [#allocation4], 0  ;;  %s230_s9 = smov [#allocation2]   ;;  %s158_s13 = scalar_lea.hbm %s286_s0, 256 }
   0x3   :  { %s15_s10 = sshll.u32 %s230_s9, 4  ;;  %p159_p0 = scmp.ne.s32.totalorder %s286_s0, %s158_s13  ;;  %s16_s10 = int_to_ptr.vmem [resolvable:$true] %s15_s10 }
   0x4   :  { %p162_p1 = scmp.lt.u32.totalorder %s158_s13, %s286_s0 }
   0x6   :  { %p164_p2 = pnand %p162_p1, %p159_p0 }
   0x8   :  { %167 = shalt.err (!%p164_p2)
}
   0x9   :  { %s168_s18 = scalar_lea.vmem %s16_s10, 256  ;;  %p173_p4 = scmp.lt.s32.totalorder %s16_s10, %s16_s10 }
   0xa   :  { %p169_p3 = scmp.ne.s32.totalorder %s16_s10, %s168_s18  ;;  %p174_p5 = scmp.lt.s32.totalorder %s168_s18, %s168_s18 }
   0xc   :  { %p175_p6 = por %p174_p5, %p173_p4 }
   0xe   :  { %p176_p7 = pnand %p175_p6, %p169_p3 }
  0x10   :  { %179 = shalt.err (!%p176_p7)
}
  0x11   :  { %s231_s19 = smov 128   ;;  %s232_s20 = smov 8  }
  0x12   :  { %21 = dma.hbm_to_vmem [thread:$0]  %s286_s0, 256, %s16_s10, [#allocation3], %s231_s19, %s231_s19, %s232_s20  }
  0x13   :  { %s233_s23 = smov [#allocation5]   ;;  %s180_s27 = scalar_lea.hbm %s287_s1, 256 }
  0x14   :  { %s27_s24 = sshll.u32 %s233_s23, 4  ;;  %p181_p8 = scmp.ne.s32.totalorder %s287_s1, %s180_s27  ;;  %s28_s24 = int_to_ptr.vmem [resolvable:$true] %s27_s24 }
  0x15   :  { %p184_p9 = scmp.lt.u32.totalorder %s180_s27, %s287_s1 }
  0x17   :  { %p186_p10 = pnand %p184_p9, %p181_p8 }
  0x19   :  { %189 = shalt.err (!%p186_p10)
}
  0x1a   :  { %s190_s4 = scalar_lea.vmem %s28_s24, 256  ;;  %p195_p12 = scmp.lt.s32.totalorder %s28_s24, %s28_s24 }
  0x1b   :  { %p191_p11 = scmp.ne.s32.totalorder %s28_s24, %s190_s4  ;;  %p196_p13 = scmp.lt.s32.totalorder %s190_s4, %s190_s4 }
  0x1d   :  { %p197_p0 = por %p196_p13, %p195_p12 }
  0x1f   :  { %p198_p1 = pnand %p197_p0, %p191_p11 }
  0x21   :  { %201 = shalt.err (!%p198_p1)
}
  0x22   :  { %33 = dma.hbm_to_vmem [thread:$0]  %s287_s1, 256, %s28_s24, [#allocation6], %s231_s19, %s231_s19, %s232_s20  }
  0x23   :  { %224 = dma.done.wait [#allocation3], 256  }
  0x24   :  { %225 = vsyncadd [#allocation3], 4294967040 }
  0x25   :  { %226 = dma.done.wait [#allocation6], 256  }
  0x26   :  { %227 = vsyncadd [#allocation6], 4294967040  ;;  %v40_v0 = vld [vmem:[#allocation2] sm:$0xff]  ;;  %v41_v1 = vld [vmem:[#allocation2 + $0x8] sm:$0xff]  ;;  %v101_v12 = vlaneseq  ;;  %s234_s1 = smov [#allocation7]  }
  0x27   :  { %v135_v2 = vmul.f32 -1.442695, %v40_v0  ;;  %v136_v3 = vmul.f32 -1.442695, %v41_v1  ;;  %v42_v14 = vld [vmem:[#allocation5] sm:$0xff]  ;;  %v43_v15 = vld [vmem:[#allocation5 + $0x8] sm:$0xff] }
  0x28   :  { %v102_v13 = vshrl.u32 %v101_v12, 7  ;;  %vm80_vm0 = vcmp.eq.f32.partialorder %v42_v14, 1.0  ;;  %vm81_vm1 = vcmp.eq.f32.partialorder %v43_v15, 1.0  ;;  %v105_v23 = vand.u32 127, %v101_v12  ;;  %s125_s6 = sshll.u32 %s234_s1, 4  ;;  %s126_s6 = int_to_ptr.vmem [resolvable:$true] %s125_s6 }
  0x29   :  { %142 = vpow2.f32 %v135_v2  ;;  %v72_v27 = vsub.f32 1.0, %v42_v14  ;;  %v73_v31 = vsub.f32 1.0, %v43_v15  ;;  %s202_s7 = scalar_lea.vmem %s126_s6, 128  ;;  %p207_p3 = scmp.lt.s32.totalorder %s126_s6, %s126_s6 }
  0x2a   :  { %144 = vpow2.f32 %v136_v3  ;;  %v103_v19 = vadd.s32 8, %v102_v13  ;;  %v106_v32 = vmul.u32 128, %v102_v13  ;;  %p203_p2 = scmp.ne.s32.totalorder %s126_s6, %s202_s7  ;;  %p208_p4 = scmp.lt.s32.totalorder %s202_s7, %s202_s7 }
  0x2c   :  { %v107_v36 = vmul.u32 128, %v103_v19  ;;  %v111_v42 = vadd.s32 %v106_v32, %v105_v23  ;;  %p209_p5 = por %p208_p4, %p207_p3 }
  0x2e   :  { %v112_v45 = vadd.s32 %v107_v36, %v105_v23  ;;  %vm113_vm2 = vcmp.lt.s32.totalorder %v111_v42, 2048  ;;  %p210_p6 = pnand %p209_p5, %p203_p2 }
  0x30   :  { %vm114_vm3 = vcmp.lt.s32.totalorder %v112_v45, 2048 }
  0x33   :  { %v143_v4 = vpop.eup %142 }
  0x34   :  { %v145_v5 = vpop.eup %144  ;;  %v50_v6 = vadd.f32 1.0, %v143_v4 }
  0x35   :  { %v51_v7 = vadd.f32 1.0, %v145_v5 }
  0x36   :  { %146 = vrcp.f32 %v50_v6 }
  0x37   :  { %148 = vrcp.f32 %v51_v7 }
  0x40   :  { %v147_v8 = vpop.eup %146 }
  0x41   :  { %v149_v9 = vpop.eup %148  ;;  %150 = vlog2.f32 %v147_v8  ;;  %v62_v10 = vsub.f32 1.0, %v147_v8 }
  0x42   :  { %152 = vlog2.f32 %v149_v9  ;;  %v63_v11 = vsub.f32 1.0, %v149_v9 }
  0x43   :  { %154 = vlog2.f32 %v62_v10  ;;  %v82_v22 = vsel %vm80_vm0, %v147_v8, %v62_v10 }
  0x44   :  { %156 = vlog2.f32 %v63_v11  ;;  %v83_v28 = vsel %vm81_vm1, %v149_v9, %v63_v11  ;;  %v84_v35 = vsub.f32 1.0, %v82_v22 }
  0x45   :  { %v85_v39 = vsub.f32 1.0, %v83_v28 }
  0x46   :  { %v86_v44 = vmul.f32 %v84_v35, %v84_v35 }
  0x47   :  { %v87_v47 = vmul.f32 %v85_v39, %v85_v39 }
  0x4b   :  { %v151_v16 = vpop.eup %150 }
  0x4c   :  { %v153_v17 = vpop.eup %152  ;;  %v57_v18 = vmul.f32 0.6931472, %v151_v16 }
  0x4d   :  { %v155_v20 = vpop.eup %154  ;;  %v59_v21 = vmul.f32 0.6931472, %v153_v17 }
  0x4e   :  { %v157_v24 = vpop.eup %156  ;;  %v60_v25 = vmax.f32 %v57_v18, -100.0  ;;  %v65_v26 = vmul.f32 0.6931472, %v155_v20 }
  0x4f   :  { %v61_v29 = vmax.f32 %v59_v21, -100.0  ;;  %v67_v30 = vmul.f32 0.6931472, %v157_v24 }
  0x50   :  { %v68_v33 = vmax.f32 %v65_v26, -100.0  ;;  %v70_v34 = vmul.f32 %v60_v25, %v42_v14 }
  0x51   :  { %v69_v37 = vmax.f32 %v67_v30, -100.0  ;;  %v71_v38 = vmul.f32 %v61_v29, %v43_v15 }
  0x52   :  { %v74_v40 = vmul.f32 %v72_v27, %v68_v33 }
  0x53   :  { %v75_v41 = vmul.f32 %v73_v31, %v69_v37 }
  0x54   :  { %v76_v43 = vadd.f32 %v74_v40, %v70_v34 }
  0x55   :  { %v77_v46 = vadd.f32 %v75_v41, %v71_v38 }
  0x56   :  { %v78_v48 = vsub.f32 0.0, %v76_v43 }
  0x57   :  { %v79_v49 = vsub.f32 0.0, %v77_v46 }
  0x58   :  { %v88_v50 = vmul.f32 %v86_v44, %v78_v48 }
  0x59   :  { %v89_v51 = vmul.f32 %v87_v47, %v79_v49 }
  0x5a   :  { %v115_v52 = vsel %vm113_vm2, %v88_v50, 0.0 }
  0x5b   :  { %v116_v53 = vsel %vm114_vm3, %v89_v51, 0.0 }
  0x5c   :  { %v117_v54 = vadd.f32 %v116_v53, %v115_v52 }
  0x5e   :  { %118 = vst [vmem:[#allocation7] sm:$0xff] %v117_v54 }
  0x5f   :  { %213 = shalt.err (!%p210_p6)
}
  0x60   :  { %s214_s10 = scalar_lea.hbm %s288_s2, 128 }
  0x61   :  { %p215_p7 = scmp.ne.s32.totalorder %s288_s2, %s214_s10  ;;  %p218_p8 = scmp.lt.u32.totalorder %s214_s10, %s288_s2 }
  0x63   :  { %p220_p9 = pnand %p218_p8, %p215_p7 }
  0x65   :  { %223 = shalt.err (!%p220_p9)
}
  0x66   :  { %128 = dma.vmem_to_hbm [thread:$0]  %s126_s6, 128, %s288_s2, [#allocation4]  }
  0x67   :  { %228 = dma.done.wait [#allocation4], 128  }
  0x68   :  { %229 = vsyncadd [#allocation4], 4294967168 }
  0x69   :  { %132 = vsyncpa [#allocation3], 1 }
  0x6a   :  { %133 = vsyncpa [#allocation6], 1 }
  0x6b   :  { %134 = vsyncpa [#allocation4], 1 }

</bundles_post_ra>
